<compile_context>
chip_gen: v7x
topology: tpu7x:2x2x1
jax: 0.10.0
libtpu: 0.0.40
codegen_flags: <defaults>
</compile_context>

<pallas_src>
import numpy as np
import jax
import jax.numpy as jnp
from jax.experimental import pallas as pl
from jax.experimental.pallas import tpu as pltpu

TIMESTEPS = 1000
POSE_TIMESTEPS = 3
_VMEM_LIMIT = 32 * 1024 * 1024


# ----------------------------------------------------------------------------------
# diffusion schedule (matches cosine_beta_schedule, computed in float64 numpy)
# ----------------------------------------------------------------------------------
def cosine_beta_schedule(timesteps, s=0.008):
    steps = timesteps + 1
    x = np.linspace(0, timesteps, steps, dtype=np.float64)
    alphas_cumprod = np.cos((x / timesteps + s) / (1 + s) * np.pi * 0.5) ** 2
    alphas_cumprod = alphas_cumprod / alphas_cumprod[0]
    betas = 1 - alphas_cumprod[1:] / alphas_cumprod[:-1]
    return np.clip(betas, 0, 0.9999)


# ----------------------------------------------------------------------------------
# tiling helpers (keep blocks within the default scoped VMEM on all generations)
# ----------------------------------------------------------------------------------
def _divisors(n):
    return [d for d in range(1, n + 1) if n % d == 0]


def _pick_thw(C, D, HW, max_bytes=2 * 1024 * 1024):
    """Largest lane tile (multiple of 128, dividing HW) whose (C, D, thw) f32 block fits."""
    cands = [d for d in _divisors(HW) if d % 128 == 0 and C * D * d * 4 <= max_bytes]
    if not cands:
        return HW  # full block (allowed: block dim == array dim)
    return max(cands)


def _pick_td(D, HW, C, H1, max_bytes=6 * 1024 * 1024):
    """Depth rows per tile for the fused kernel, budgeted on the hidden activation."""
    if HW % 128 != 0:
        return D  # single full block so the lane dim equals the array dim
    per_row = 4 * HW * (H1 + 16 * C)  # h + x_cat + double-buffered inputs + temps (f32)
    cands = [d for d in _divisors(D) if d * per_row <= max_bytes]
    td = max(cands) if cands else 1
    if td == D and D > 1:  # prefer >=2 tiles per sample so the DMA pipeline overlaps
        smaller = [d for d in cands if d < D]
        if smaller:
            td = max(smaller)
    return td


# ----------------------------------------------------------------------------------
# Pallas kernels
# ----------------------------------------------------------------------------------
def _fp_kernel(vol_ref, xray_ref):
    # q_sample_pose_* hot path: ray integral over the volume.
    # TODO(synk): real DRRProjector does cone-beam trilinear ray casting with a 6-DoF
    # pose matrix; approximated here by a parallel projection (mean over depth).
    xray_ref[...] = jnp.mean(vol_ref[...], axis=2)          # (1,C,D,Thw) -> (1,C,Thw)


def _cond_kernel(x_ref, o_ref):
    # NormLayer (per-sample min-max) fused with building the conditioning stack
    # [xray_T (raw), xray_0 (normalized), xray_025 (normalized)].
    x = x_ref[0]                                            # (C, HW)
    mn = jnp.min(x)
    mx = jnp.max(x)
    xn = (x - mn) / jnp.maximum(mx - mn, 1e-12)             # epsilon guard vs. constant image
    o_ref[0] = jnp.concatenate([x, xn, xn], axis=0)         # (3C, HW)


# ----------------------------------------------------------------------------------
# pallas_call wrappers
# ----------------------------------------------------------------------------------
def fp_project(vol):
    """vol: (B, C, D, HW) -> detector image (B, C, HW), computed once per sample."""
    B, C, D, HW = vol.shape
    thw = _pick_thw(C, D, HW)
    nhw = HW // thw
    return pl.pallas_call(
        _fp_kernel,
        out_shape=jax.ShapeDtypeStruct((B, C, HW), vol.dtype),
        grid=(B, nhw),
        in_specs=[pl.BlockSpec((1, C, D, thw), lambda b, t: (b, 0, 0, t))],
        out_specs=pl.BlockSpec((1, C, thw), lambda b, t: (b, 0, t)),
        compiler_params=pltpu.CompilerParams(
            dimension_semantics=("parallel", "parallel"),
            vmem_limit_bytes=_VMEM_LIMIT),
    )(vol)


def build_cond(xray):
    """xray: (B, C, HW) raw detector image -> (B, 3C, HW) conditioning stack."""
    B, C, HW = xray.shape
    return pl.pallas_call(
        _cond_kernel,
        out_shape=jax.ShapeDtypeStruct((B, 3 * C, HW), xray.dtype),
        grid=(B,),
        in_specs=[pl.BlockSpec((1, C, HW), lambda b: (b, 0, 0))],
        out_specs=pl.BlockSpec((1, 3 * C, HW), lambda b: (b, 0, 0)),
        compiler_params=pltpu.CompilerParams(
            dimension_semantics=("parallel",),
            vmem_limit_bytes=_VMEM_LIMIT),
    )(xray)


def fused_fine_loss(ct_flat, noise, xcond, a_t, s_t, params, *, hw):
    """Fused bp-broadcast + q_sample + fine MLP + L1 reduction.

    ct_flat, noise : (B, C, D*HW) f32
    xcond          : (B, 3C, HW)  f32   [xray_T(raw), xray_0(norm), xray_025(norm)]
    a_t, s_t       : (B,)         f32   sqrt(alpha_cumprod[t]), sqrt(1-alpha_cumprod[t])
    returns        : (B, 1, 1)    f32   per-sample sum |ct_vq - ct_pred|
    """
    B, C, DHW = ct_flat.shape
    D = DHW // hw
    H1 = params["w1"].shape[0]
    Cout = params["w2"].shape[0]
    td = _pick_td(D, hw, C, H1)
    tn = td * hw
    n_t = DHW // tn
    rep = td

    def kernel(a_ref, s_ref, ct_ref, nz_ref, xc_ref,
               w1_ref, b1_ref, w2_ref, b2_ref, out_ref):
        b = pl.program_id(0)
        t = pl.program_id(1)

        @pl.when(t == 0)
        def _init():
            out_ref[...] = jnp.zeros_like(out_ref)

        a = a_ref[b]                                # per-sample q_sample scalars (SMEM)
        s = s_ref[b]

        ct = ct_ref[0]                              # (C, tn)
        ct_vq = ct * 2.0 - 1.0                      # TODO(synk): VQGAN encode stand-in
        x_noisy = a * ct_vq + s * nz_ref[0]         # q_sample fused in-register
        # TODO(synk): noise could be drawn in-kernel with pltpu.prng_random_bits to save
        # one full-volume HBM read; kept as an explicit input to match q_sample(noise=...).

        # back projection == detector image broadcast along depth: repeat along lanes.
        # TODO(synk): real DRRProjector backward is trilinear back-projection along rays.
        xc_rep = jnp.concatenate([xc_ref[0]] * rep, axis=-1)      # (3C, tn)
        x_cat = jnp.concatenate([xc_rep, x_noisy], axis=0)        # (4C, tn)

        # TODO(synk): the real fine_model is an external timestep-conditioned 3D UNet;
        # stand-in is a per-voxel (1x1x1 conv) MLP on lane-dense tiles.
        h = jnp.dot(w1_ref[...], x_cat, preferred_element_type=jnp.float32) + b1_ref[...]
        h = jnp.maximum(h, 0.0)
        y = jnp.dot(w2_ref[...], h, preferred_element_type=jnp.float32) + b2_ref[...]

        # L1 epilogue: accumulate sum(|target - pred|) into the resident output block.
        out_ref[...] += jnp.sum(jnp.abs(ct_vq - y))

    return pl.pallas_call(
        kernel,
        out_shape=jax.ShapeDtypeStruct((B, 1, 1), jnp.float32),
        grid=(B, n_t),
        in_specs=[
            pl.BlockSpec(memory_space=pltpu.MemorySpace.SMEM),      # a_t (B,)
            pl.BlockSpec(memory_space=pltpu.MemorySpace.SMEM),      # s_t (B,)
            pl.BlockSpec((1, C, tn), lambda b, t: (b, 0, t)),       # ct
            pl.BlockSpec((1, C, tn), lambda b, t: (b, 0, t)),       # noise
            pl.BlockSpec((1, 3 * C, hw), lambda b, t: (b, 0, 0)),   # conditioning images
            pl.BlockSpec((H1, 4 * C), lambda b, t: (0, 0)),         # w1 (concat order: xT,0,025,noisy)
            pl.BlockSpec((H1, 1), lambda b, t: (0, 0)),             # b1
            pl.BlockSpec((Cout, H1), lambda b, t: (0, 0)),          # w2
            pl.BlockSpec((Cout, 1), lambda b, t: (0, 0)),           # b2
        ],
        out_specs=pl.BlockSpec((1, 1, 1), lambda b, t: (b, 0, 0)),
        compiler_params=pltpu.CompilerParams(
            dimension_semantics=("parallel", "arbitrary"),
            vmem_limit_bytes=_VMEM_LIMIT),
    )(a_t, s_t, ct_flat, noise, xcond,
      params["w1"], params["b1"], params["w2"], params["b2"])


# ----------------------------------------------------------------------------------
# FineStage.forward
# ----------------------------------------------------------------------------------
def make_params(key, cin, hidden, cout):
    k1, k2 = jax.random.split(key)
    return dict(
        w1=(jax.random.normal(k1, (hidden, cin), jnp.float32) * 0.1),
        b1=jnp.zeros((hidden, 1), jnp.float32),
        w2=(jax.random.normal(k2, (cout, hidden), jnp.float32) * 0.1),
        b2=jnp.zeros((cout, 1), jnp.float32),
    )


def fine_stage_forward(ct, params, key):
    """ct: (B, C, D, H, W) float32 (PyTorch NCDHW). Returns the scalar L1 training loss."""
    B, C, D, H, W = ct.shape
    HW = H * W

    # register_buffer equivalents
    betas = cosine_beta_schedule(TIMESTEPS)
    alphas = 1.0 - betas
    alphas_cumprod = np.cumprod(alphas)
    sqrt_alphas_cumprod = jnp.asarray(np.sqrt(alphas_cumprod), jnp.float32)
    sqrt_one_minus_alphas_cumprod = jnp.asarray(np.sqrt(1.0 - alphas_cumprod), jnp.float32)

    k_t, k_noise = jax.random.split(key)
    t = jax.random.randint(k_t, (B,), 0, TIMESTEPS)      # torch.randint(0, num_timesteps, (b,))

    # q_sample_pose_xT / _0 / _025: the projection is computed ONCE (the three calls are
    # identical with the placeholder parallel projector); norm + stacking fused into one
    # tiny per-sample kernel.  xray_T stays un-normalized, xray_0/xray_025 are normalized.
    vol = ct.reshape(B, C, D, HW)
    xray_raw = fp_project(vol)                           # (B, C, HW)
    xcond = build_cond(xray_raw)                         # (B, 3C, HW)
    # TODO(synk): the coarse fit_model + VQGAN round-trip producing ct_bp_xray_pred is
    # external; the normalized projection stands in for that conditioning channel.

    a_t = sqrt_alphas_cumprod[t]                         # (B,)
    s_t = sqrt_one_minus_alphas_cumprod[t]               # (B,)

    ct_flat = ct.reshape(B, C, D * HW)                   # free metadata reshape
    noise = jax.random.normal(k_noise, ct_flat.shape, jnp.float32)

    # Fused: bp depth-broadcast + q_sample + fine_model MLP + L1 reduction.
    sums = fused_fine_loss(ct_flat, noise, xcond, a_t, s_t, params, hw=HW)  # (B,1,1)

    # loss_type == 'l1': mean over all elements
    return jnp.sum(sums) / (B * C * D * HW)


if __name__ == "__main__":
    key = jax.random.PRNGKey(0)
    k_ct, k_par, k_fwd = jax.random.split(key, 3)

    B, C, S = 2, 1, 16                                   # input_img_size = num_frames = 16
    ct = jax.random.uniform(k_ct, (B, C, S, S, S), jnp.float32)
    params = make_params(k_par, cin=4 * C, hidden=32, cout=C)

    loss = fine_stage_forward(ct, params, k_fwd)
    jax.block_until_ready(loss)
    assert loss.shape == () and bool(jnp.isfinite(loss))
    print("KERNEL_OK")
</pallas_src>

<mosaic_0001>
module attributes {stable_mosaic.version = 11 : i64} {
  func.func @_fp_kernel(%arg0: i32, %arg1: i32, %arg2: memref<1x1x16x256xf32, #tpu.memory_space<vmem>>, %arg3: memref<1x1x256xf32, #tpu.memory_space<vmem>>) attributes {dimension_semantics = [#tpu.dimension_semantics<parallel>, #tpu.dimension_semantics<parallel>], iteration_bounds = array<i64: 2, 1>, scalar_prefetch = 0 : i64, scratch_operands = 0 : i64, tpu.core_type = #tpu.core_type<tc>, window_params = [{transform_indices = @transform_0, window_bounds = array<i64: 1, 1, 16, 256>}, {transform_indices = @transform_1, window_bounds = array<i64: 1, 1, 256>}]} {
    %c0 = arith.constant 0 : index
    %c0_0 = arith.constant 0 : index
    %c0_1 = arith.constant 0 : index
    %c0_2 = arith.constant 0 : index
    %0 = vector.load %arg2[%c0, %c0_0, %c0_1, %c0_2] : memref<1x1x16x256xf32, #tpu.memory_space<vmem>>, vector<1x1x16x256xf32>
    %cst = arith.constant dense<0.000000e+00> : vector<1x1x256xf32>
    %1 = vector.multi_reduction <add>, %0, %cst [2] : vector<1x1x16x256xf32> to vector<1x1x256xf32>
    %cst_3 = arith.constant 1.600000e+01 : f32
    %2 = vector.broadcast %cst_3 : f32 to vector<1x1x256xf32>
    %3 = arith.divf %1, %2 : vector<1x1x256xf32>
    %c0_4 = arith.constant 0 : index
    %c0_5 = arith.constant 0 : index
    %c0_6 = arith.constant 0 : index
    %4 = vector.load %arg3[%c0_4, %c0_5, %c0_6] : memref<1x1x256xf32, #tpu.memory_space<vmem>>, vector<1x1x256xf32>
    tpu.vector_store %arg3[%c0_4, %c0_5, %c0_6], %3 {strides = array<i32>} : memref<1x1x256xf32, #tpu.memory_space<vmem>>, vector<1x1x256xf32>,
    return
  }
  func.func @transform_0(%arg0: i32, %arg1: i32) -> (i32, i32, i32, i32) {
    %c0_i32 = arith.constant 0 : i32
    %c0_i32_0 = arith.constant 0 : i32
    %c0_i32_1 = arith.constant 0 : i32
    return %arg0, %c0_i32, %c0_i32_0, %arg1 : i32, i32, i32, i32
  }
  func.func @transform_1(%arg0: i32, %arg1: i32) -> (i32, i32, i32) {
    %c0_i32 = arith.constant 0 : i32
    %c0_i32_0 = arith.constant 0 : i32
    return %arg0, %c0_i32, %arg1 : i32, i32, i32
  }
}

</mosaic_0001>

<bundles_post_ra>
// kernel: tpu_custom_call.1
= control target key start
LH: loop header
LB: loop body
LE: loop exit
PB: predicated region body
PF: predicated region fallthrough
CT: control target
= control target key end

     0   :  { %6 = vsyncpa [#allocation3], 0  ;;  %s685_s0 = inlined_call_operand.hbm [shape: f32[2,1,16,256], index: 0, kind: input, shape index: {}]   ;;  %s686_s1 = inlined_call_operand.hbm [shape: f32[2,1,256], index: 1, kind: output, shape index: {}]  }
   0x1   :  { %8 = vsyncpa [#allocation3 + $0x1], 0 }
   0x2   :  { %9 = vsyncpa [#allocation4], 0 }
   0x3   :  { %11 = vsyncpa [#allocation4 + $0x1], 0  ;;  %s511_s6 = smov 0   ;;  %s513_s7 = smov 0  }
   0x4   :  { %s515_s8 = smov 0   ;;  %s517_s9 = smov 0  }
   0x5   :  { %s519_s10 = smov 0   ;;  %s521_s11 = smov 0  }
   0x6 LB: > { %s300_s12 = sadd.s32 4294967295, %s494_s11   ;;  %s301_s13 = sadd.s32 4294967294, %s494_s11   ;;  %s494_s11 = sphi %s521_s11, %s17_s11   ;;  %s490_s10 = sphi %s519_s10, %s701_s10   ;;  %s486_s9 = sphi %s517_s9, %s700_s9   ;;  %s482_s8 = sphi %s515_s8, %s699_s8   ;;  %s478_s7 = sphi %s513_s7, %s698_s7   ;;  %s474_s6 = sphi %s511_s6, %s697_s6  }
   0x7   : > { %s29_s14 = sadd.s32 1, %s490_s10  ;;  %s38_s15 = sadd.s32 1, %s482_s8 }
   0x8   : > { %p31_p0 = scmp.ge.s32.totalorder %s29_s14, 2  ;;  %p45_p1 = scmp.ne.s32.totalorder %s482_s8, %s478_s7 }
   0x9   : > { %p46_p2 = scmp.eq.s32.totalorder %s494_s11, 0  ;;  %p51_p3 = scmp.ne.s32.totalorder %s478_s7, %s474_s6 }
   0xa   : > { %s703_s14 = smov (%p31_p0, %s29_s14), 0  ;;  %p52_p5 = scmp.eq.s32.totalorder %s300_s12, 0 }
   0xb   : > { %p552_p4 = por %p46_p2, %p45_p1  ;;  %s33_s17 = ssub.s32 %s490_s10, %s703_s14 }
   0xc   : > { %p77_p6 = scmp.eq.s32.totalorder %s300_s12, 1  ;;  %p36_p7 = scmp.eq.s32.totalorder %s33_s17, 0 }
   0xd   : > { %p558_p8 = por %p52_p5, %p51_p3  ;;  %p83_p10 = scmp.eq.s32.totalorder %s301_s13, 1 }
   0xe   : > { %p562_p9 = por %p77_p6, %p45_p1  ;;  %p329_p13 = scmp.lt.s32.totalorder %s494_s11, 2 }
   0xf   : > { %s567_s20 = scalar_select %p36_p7, %s482_s8, %s38_s15  }
  0x10   : > { %s690_s19 = scalar_select %p562_p9, 1, 0 }
  0x11   : > { %p569_p11 = por %p83_p10, %p51_p3  ;;  %s103_s22 = sand.u32 1, %s482_s8  }
  0x12   : > { %s304_s23 = sshll.u32 %s103_s22, 5  ;;  %s315_s24 = sshll.u32 %s490_s10, 9 }
  0x13   : > { %s691_s21 = scalar_select %p569_p11, 1, 0 }
  0x14   : > { %s580_s27 = scalar_lea.hbm %s685_s0, %s315_s24  ;;  %s107_s28 = scalar_lea.vmem [#allocation2], %s304_s23 }
  0x15   : > { %s116_s29 = sshll.u32 %s107_s28, 4  ;;  %p586_p0 = pnand %p329_p13, %p552_p4  ;;  %s582_s29 = int_to_ptr.vmem [resolvable:$true] %s116_s29 }
  0x16   : > { %s591_s2 = scalar_lea.sflag [#allocation3], %s103_s22  ;;  %s382_s3 = scalar_lea.hbm %s580_s27, 512 }
  0x17   : > { %p383_p2 = scmp.ne.s32.totalorder %s580_s27, %s382_s3  ;;  %p384_p3 = pneg %p586_p0 }
  0x18   : > { %s387_s12 = scalar_lea.hbm %s685_s0, 1024  ;;  %p388_p4 = scmp.lt.u32.totalorder %s580_s27, %s685_s0 }
  0x19   : > { %p385_p5 = pnand %p384_p3, %p383_p2  ;;  %p389_p7 = scmp.lt.u32.totalorder %s387_s12, %s382_s3 }
  0x1a   : > { %p391_p13 = scmp.lt.u32.totalorder %s382_s3, %s580_s27 }
  0x1b   : > { %p386_p6 = pneg %p385_p5  ;;  %p390_p10 = por %p389_p7, %p388_p4 }
  0x1d   : > { %p392_p12 = por %p391_p13, %p390_p10 }
  0x1f   : > { %p393_p1 = pnand %p392_p12, %p386_p6 }
  0x21   : > { %396 = shalt.err (!%p393_p1)
}
  0x22   : > { %s397_s16 = scalar_lea.vmem %s582_s29, 512  ;;  %s496_s17 = smov [#allocation2]  }
  0x23   : > { %p398_p2 = scmp.ne.s32.totalorder %s582_s29, %s397_s16  ;;  %s402_s22 = sshll.u32 %s496_s17, 4  ;;  %s403_s22 = int_to_ptr.vmem [resolvable:$false] %s402_s22 }
  0x24   : > { %s404_s23 = scalar_lea.vmem %s403_s22, 1024  ;;  %p405_p9 = scmp.lt.s32.totalorder %s582_s29, %s403_s22 }
  0x25   : > { %p400_p5 = pnand %p398_p2, %p384_p3  ;;  %p406_p4 = scmp.lt.s32.totalorder %s404_s23, %s397_s16 }
  0x27   : > { %p401_p11 = pneg %p400_p5  ;;  %p407_p7 = por %p406_p4, %p405_p9 }
  0x29   : > { %p408_p10 = pnand %p407_p7, %p401_p11 }
  0x2b   : > { %411 = shalt.err (!%p408_p10)
}
  0x2c   : > { %s497_s24 = smov 256   ;;  %s498_s25 = smov 16  }
  0x2d   : > { %324 = dma.hbm_to_vmem [thread:$0]  (!%p586_p0), %s580_s27, 512, %s582_s29, %s591_s2, %s497_s24, %s497_s24, %s498_s25  }
  0x2e   : > { %p124_p12 = scmp.lt.s32.totalorder %s494_s11, 3  ;;  %p693_p1 = scmp.ge.s32.totalorder %s494_s11, 1 }
  0x30   : > { %p125_p3 = pnand %p693_p1, %p124_p12 }
  0x31   : > { %s623_s26 = sand.u32 (!%p125_p3), 1, %s478_s7  }
  0x32   : > { %128 = sbr.rel (%p125_p3) target bundleno = 96 (0x60), region = 24  ;;  %s308_s28 = sshll.u32 (!%p125_p3), %s623_s26, 5 }
  0x33   : > { %s131_s3 = scalar_lea.sflag (!%p125_p3), [#allocation3], %s623_s26  ;;  %s134_s4 = scalar_lea.vmem (!%p125_p3), [#allocation2], %s308_s28 }
  0x39   : > { %465 = dma.done.wait (%p558_p8), %s131_s3, 512  }
  0x3a   : > { %467 = vsyncadd (%p558_p8), %s131_s3, 4294966784  ;;  %v155_v0 = vld [vmem:[%s134_s4] sm:$0xff]  ;;  %v156_v1 = vld [vmem:[%s134_s4 + $0x8] sm:$0xff]  ;;  %v499_v12 = vmov 1966171168   ;;  %v182_v14 = vlaneseq  ;;  %s309_s18 = sshll.u32 %s623_s26, 1 }
  0x3b   : > { %v157_v2 = vld [vmem:[%s134_s4 + $0x10] sm:$0xff]  ;;  %v158_v3 = vld [vmem:[%s134_s4 + $0x18] sm:$0xff]  ;;  %v180_v13 = vunpack.c.l.s4 %v499_v12  ;;  %s152_s27 = scalar_lea.vmem [#allocation5], %s309_s18  ;;  %s316_s30 = sshll.u32 %s486_s9, 5 }
  0x3c   : > { %v159_v4 = vadd.f32 %v157_v2, %v155_v0  ;;  %v166_v5 = vadd.f32 %v158_v3, %v156_v1  ;;  %v183_v20 = vshrl.u32 %v182_v14, 7  ;;  %s216_s29 = sshll.u32 %s152_s27, 4  ;;  %vm196_vm0 = vcmp.lt.s32.totalorder %v182_v14, 256  ;;  %s638_s12 = scalar_lea.hbm %s686_s1, %s316_s30  ;;  %s633_s29 = int_to_ptr.vmem [resolvable:$true] %s216_s29 }
  0x3d   : > { %v181_v19 = vunpack.c.0.s8 %v180_v13  ;;  %s200_s13 = scalar_lea.sflag [#allocation4], %s623_s26  ;;  %s412_s15 = scalar_lea.vmem %s633_s29, 32 }
  0x3e   : > { %v160_v6 = vrot.slane %v159_v4, 4  ;;  %v167_v7 = vrot.slane %v166_v5, 4  ;;  %p413_p8 = scmp.ne.s32.totalorder %s633_s29, %s412_s15  ;;  %p694_p9 = scmp.ne.s32.totalorder %s690_s19, 0 }
  0x3f   : > { %v184_v25 = vsub.s32 %v181_v19, %v183_v20  ;;  %s500_s9 = smov [#allocation5]  }
  0x40   : > { %v161_v8 = vadd.f32 %v160_v6, %v159_v4  ;;  %v168_v9 = vadd.f32 %v167_v7, %v166_v5  ;;  %p414_p11 = pnand %p413_p8, %p694_p9  ;;  %s416_s16 = sshll.u32 %s500_s9, 4  ;;  %s417_s16 = int_to_ptr.vmem [resolvable:$false] %s416_s16 }
  0x41   : > { %s418_s17 = scalar_lea.vmem %s417_s16, 64  ;;  %p419_p6 = scmp.lt.s32.totalorder %s633_s29, %s417_s16 }
  0x42   : > { %v162_v10 = vrot.slane %v161_v8, 2  ;;  %v169_v11 = vrot.slane %v168_v9, 2  ;;  %p415_p0 = pneg %p414_p11  ;;  %p420_p13 = scmp.lt.s32.totalorder %s418_s17, %s412_s15 }
  0x44   : > { %v163_v15 = vadd.f32 %v162_v10, %v161_v8  ;;  %v170_v16 = vadd.f32 %v169_v11, %v168_v9  ;;  %p421_p2 = por %p420_p13, %p419_p6 }
  0x46   : > { %v164_v17 = vrot.slane %v163_v15, 1  ;;  %v171_v18 = vrot.slane %v170_v16, 1  ;;  %p422_p5 = pnand %p421_p2, %p415_p0 }
  0x48   : > { %v165_v21 = vadd.f32 %v164_v17, %v163_v15  ;;  %v172_v22 = vadd.f32 %v171_v18, %v170_v16 }
  0x4a   : > { %v174_v23 = vmul.f32 0.0625, %v165_v21  ;;  %v175_v24 = vmul.f32 0.0625, %v172_v22 }
  0x4c   : > { %v178_v26 = vcombine.low %v174_v23, %v175_v24 }
  0x4e   : > { %v185_v27 = vrot.slane %v178_v26, %v184_v25 }
  0x50   : > { %v192_v28 = vrot.slane %v185_v27, %v184_v25 }
  0x52   : > { %198 = vst.msk [vmem:[%s152_s27] sm:$0x3] %vm196_vm0, %v192_v28 }
  0x53   : > { %425 = shalt.err (!%p422_p5)
}
  0x54   : > { %s426_s22 = scalar_lea.hbm %s638_s12, 32  ;;  %s430_s25 = scalar_lea.hbm %s686_s1, 64 }
  0x55   : > { %p427_p4 = scmp.ne.s32.totalorder %s638_s12, %s426_s22  ;;  %p431_p12 = scmp.lt.u32.totalorder %s638_s12, %s686_s1 }
  0x56   : > { %p432_p1 = scmp.lt.u32.totalorder %s430_s25, %s426_s22  ;;  %p434_p8 = scmp.lt.u32.totalorder %s426_s22, %s638_s12 }
  0x57   : > { %p428_p7 = pnand %p427_p4, %p694_p9 }
  0x58   : > { %p433_p3 = por %p432_p1, %p431_p12 }
  0x59   : > { %p429_p10 = pneg %p428_p7 }
  0x5a   : > { %p435_p11 = por %p434_p8, %p433_p3 }
  0x5c   : > { %p436_p0 = pnand %p435_p11, %p429_p10 }
  0x5e   : > { %439 = shalt.err (!%p436_p0)
}
  0x5f   : > { %319 = dma.vmem_to_hbm [thread:$0]  (%p694_p9), %s633_s29, 32, %s638_s12, %s200_s13  }
  0x60 PF: > { %s228_s3 = sand.u32 1, %s474_s6   ;;  %p695_p6 = scmp.ne.s32.totalorder %s691_s21, 0 }
  0x61   : > { %p696_p13 = scmp.ge.s32.totalorder %s494_s11, 2  ;;  %s229_s4 = scalar_lea.sflag [#allocation4], %s228_s3 }
  0x63   : > { %p326_p2 = pnand %p696_p13, %p695_p6 }
  0x65   : > { %469 = dma.done.wait (!%p326_p2), %s229_s4, 32  }
  0x66   : > { %471 = vsyncadd (!%p326_p2), %s229_s4, 4294967264  ;;  %s17_s11 = sadd.s32 1, %s494_s11   ;;  %s697_s6 = smov %s478_s7 }
  0x67   : > { %p14_p5 = scmp.ge.s32.totalorder %s17_s11, 4   ;;  %s698_s7 = smov %s482_s8 }
  0x68   : > { %s699_s8 = smov %s567_s20  ;;  %s700_s9 = smov %s490_s10 }
  0x69   : > { %s701_s10 = smov %s703_s14  ;;  %16 = sbr.rel (!%p14_p5) target bundleno = 6 (0x6), region = 69 }
  0x70   :  { %234 = vsyncpa [#allocation3], 1 }
  0x71   :  { %236 = vsyncpa [#allocation3 + $0x1], 1 }
  0x72   :  { %237 = vsyncpa [#allocation4], 1 }
  0x73   :  { %239 = vsyncpa [#allocation4 + $0x1], 1 }

</bundles_post_ra>
